<compile_context>
chip_gen: v7x
topology: tpu7x:2x2x1
jax: 0.10.0
libtpu: 0.0.40
codegen_flags: <defaults>
</compile_context>

<pallas_src>
import functools

import jax
import jax.numpy as jnp
import numpy as np
from jax.experimental import pallas as pl
from jax.experimental.pallas import tpu as pltpu


def _round_up(x, m):
    return ((x + m - 1) // m) * m


def _stable_softplus(x):
    # log1p(exp(x)) without overflow for large x (model uses rho ~ -9).
    return jnp.where(x > 20.0, x, jnp.log1p(jnp.exp(jnp.minimum(x, 20.0))))


def _vmem_capacity_bytes():
    # Generation-aware VMEM budget (v7x: 64 MiB, v5e/v6e: 128 MiB).
    try:
        info = pltpu.get_tpu_info()
        cap = getattr(info, "vmem_capacity_bytes", None)
        if cap:
            return int(cap)
    except Exception:
        pass
    return 64 << 20   # conservative default (v7x per-core VMEM)


def _maybe_single_buffered_spec(block_shape, index_map, *, single):
    """BlockSpec; grid-invariant blocks request single buffering when possible."""
    if single and hasattr(pl, "Buffered"):
        try:
            return pl.BlockSpec(block_shape, index_map,
                                pipeline_mode=pl.Buffered(1))
        except TypeError:
            pass
    return pl.BlockSpec(block_shape, index_map)


# --------------------------------------------------------------------------
# Kernel 1: one-shot reparameterized sampling (tiled over the KH*KW taps).
# --------------------------------------------------------------------------
def _sample_kernel(wmu_ref, wrho_ref, gam_ref, epsw_ref,
                   bmu_ref, brho_ref, epsb_ref, w_ref, b_ref):
    # weight = cgamma * Gaussian(mu, rho).rsample()   (sigma = softplus(rho))
    w = gam_ref[...] * (wmu_ref[...]
                        + _stable_softplus(wrho_ref[...]) * epsw_ref[...])
    w_ref[...] = w.astype(w_ref.dtype)            # emitted directly in matmul dtype
    # bias = Gaussian(bias_mu, bias_rho).rsample() (tiny; recomputed per step,
    # same value every time -> safe, avoids a second launch)
    b_ref[...] = bmu_ref[...] + _stable_softplus(brho_ref[...]) * epsb_ref[...]


# --------------------------------------------------------------------------
# Kernel 2: conv-as-matmul with in-kernel im2col (shifted contiguous slices).
# --------------------------------------------------------------------------
def _conv_kernel(x_ref, w_ref, b_ref, o_ref, *, tap_offsets, m_img):
    # x_ref: (1, L_pad, C)      matmul dtype  (flattened channels-last image)
    # w_ref: (n_taps, C, tn)    matmul dtype  (sampled weight, per-tap slabs)
    # b_ref: (1, tn)            f32           (sampled bias)
    # o_ref: (1, m_img, tn)     f32
    acc = None
    for t, off in enumerate(tap_offsets):                       # static unroll
        xs = x_ref[0, off:off + m_img, :]                       # (m_img, C)
        d = jnp.dot(xs, w_ref[t], preferred_element_type=jnp.float32)
        acc = d if acc is None else acc + d
    o_ref[0] = (acc + b_ref[...].astype(jnp.float32)).astype(o_ref.dtype)


def bayesian_conv2d(x_nchw, weight_mu, weight_rho, cgamma, eps_w,
                    bias_mu, bias_rho, eps_b, *,
                    matmul_dtype=jnp.bfloat16, return_nhwc=False):
    """Forward pass of BayesianConv2d (training/sample branch):
       F.conv2d(x, cgamma * weight.rsample(), bias.rsample()), stride 1, no pad."""
    N, C, H, W = x_nchw.shape
    O, _, KH, KW = weight_mu.shape
    OH, OW = H - KH + 1, W - KW + 1
    n_taps = KH * KW
    M_img = OH * W                               # per-image rows incl. invalid cols
    L_pad = _round_up(H * W + KW - 1, 8)         # flattened spatial, with tap overrun
    O_pad = _round_up(O, 128)                    # lane-dense output channels

    mm_dtype = jnp.dtype(matmul_dtype)
    itemsize = mm_dtype.itemsize

    # ---- parameters -> (n_taps, C, O_pad) / (1, O_pad) matmul layout (tiny glue)
    def _flat_w(p):                              # (O, C, KH, KW) -> (n_taps, C, O_pad)
        q = p.transpose(2, 3, 1, 0).reshape(n_taps, C, O)
        return jnp.pad(q, ((0, 0), (0, 0), (0, O_pad - O)))

    def _flat_b(p):                              # (O,) -> (1, O_pad)
        return jnp.pad(p.reshape(1, O), ((0, 0), (0, O_pad - O)))

    vmem_cap = _vmem_capacity_bytes()
    budget = max(vmem_cap - (16 << 20), 24 << 20)

    # ---- sampling kernel (weights/bias sampled exactly once, tiled over taps)
    samp_need = (8 * C * O_pad * 4               # 4 f32 weight-param inputs, 2 bufs
                 + 2 * C * O_pad * itemsize      # sampled-weight output, 2 bufs
                 + 8 * O_pad * 4)                # bias params + output
    samp_limit = int(min(max(samp_need + (4 << 20), 16 << 20), budget))

    w_s, b_s = pl.pallas_call(
        _sample_kernel,
        out_shape=(jax.ShapeDtypeStruct((n_taps, C, O_pad), mm_dtype),
                   jax.ShapeDtypeStruct((1, O_pad), jnp.float32)),
        grid=(n_taps,),
        in_specs=[
            pl.BlockSpec((1, C, O_pad), lambda t: (t, 0, 0)),    # weight_mu
            pl.BlockSpec((1, C, O_pad), lambda t: (t, 0, 0)),    # weight_rho
            pl.BlockSpec((1, C, O_pad), lambda t: (t, 0, 0)),    # cgamma
            pl.BlockSpec((1, C, O_pad), lambda t: (t, 0, 0)),    # eps_w
            pl.BlockSpec((1, O_pad), lambda t: (0, 0)),          # bias_mu
            pl.BlockSpec((1, O_pad), lambda t: (0, 0)),          # bias_rho
            pl.BlockSpec((1, O_pad), lambda t: (0, 0)),          # eps_b
        ],
        out_specs=[
            pl.BlockSpec((1, C, O_pad), lambda t: (t, 0, 0)),    # sampled weight
            pl.BlockSpec((1, O_pad), lambda t: (0, 0)),          # sampled bias
        ],
        compiler_params=pltpu.CompilerParams(
            dimension_semantics=("arbitrary",),
            vmem_limit_bytes=samp_limit),
    )(_flat_w(weight_mu), _flat_w(weight_rho), _flat_w(cgamma), _flat_w(eps_w),
      _flat_b(bias_mu), _flat_b(bias_rho), _flat_b(eps_b))

    # ---- flattened channels-last input (single cheap pass; no KH*KW blowup)
    x_flat = x_nchw.transpose(0, 2, 3, 1).reshape(N, H * W, C)
    x_flat = jnp.pad(x_flat, ((0, 0), (0, L_pad - H * W), (0, 0)))
    x_flat = x_flat.astype(mm_dtype)

    # ---- output-channel tiling (tn), fitted to the VMEM budget
    def _need(tn_):
        n_o_ = O_pad // tn_
        return (2 * L_pad * C * itemsize                         # x, double-buffered
                + (1 if n_o_ == 1 else 2) * n_taps * C * tn_ * itemsize  # weight
                + 2 * tn_ * 4                                    # bias
                + 3 * M_img * tn_ * 4)                           # out + f32 accum

    tn = O_pad if O_pad <= 512 else (256 if O_pad % 256 == 0 else 128)
    while tn > 128 and _need(tn) + (4 << 20) > budget:
        nxt = tn // 2
        if nxt % 128 != 0 or O_pad % nxt != 0:
            break
        tn = nxt
    n_o = O_pad // tn
    conv_limit = int(min(max(_need(tn) + (8 << 20), 32 << 20), budget))

    tap_offsets = tuple(i * W + j for i in range(KH) for j in range(KW))
    kernel = functools.partial(_conv_kernel, tap_offsets=tap_offsets, m_img=M_img)

    cost = pl.CostEstimate(
        flops=2 * N * M_img * n_taps * C * O_pad,
        transcendentals=0,
        bytes_accessed=(N * L_pad * C + n_taps * C * O_pad) * itemsize
                       + (N * M_img * O_pad + O_pad) * 4,
    )

    out_full = pl.pallas_call(
        kernel,
        out_shape=jax.ShapeDtypeStruct((N, M_img, O_pad), jnp.float32),
        grid=(N, n_o),                                   # >=2 parallel steps for N>=2
        in_specs=[
            pl.BlockSpec((1, L_pad, C), lambda n, jo: (n, 0, 0)),         # image
            _maybe_single_buffered_spec((n_taps, C, tn),
                                        lambda n, jo: (0, 0, jo),
                                        single=(n_o == 1)),               # weight
            _maybe_single_buffered_spec((1, tn),
                                        lambda n, jo: (0, jo),
                                        single=(n_o == 1)),               # bias
        ],
        out_specs=pl.BlockSpec((1, M_img, tn), lambda n, jo: (n, 0, jo)),
        compiler_params=pltpu.CompilerParams(
            dimension_semantics=("parallel", "parallel"),
            vmem_limit_bytes=conv_limit),
        cost_estimate=cost,
    )(x_flat, w_s, b_s)

    # (N, OH*W, O_pad) -> (N, OH, W, O_pad); columns >= OW are invalid fill.
    out_nhwc = out_full.reshape(N, OH, W, O_pad)
    if return_nhwc:
        return out_nhwc                      # consumer slices [:, :, :OW, :O] itself
    # Match the PyTorch module's NCHW return layout.
    return out_nhwc[:, :, :OW, :O].transpose(0, 3, 1, 2)     # (N, O, OH, OW)


if __name__ == "__main__":
    key = jax.random.PRNGKey(0)
    kx, kwmu, kwrho, kbmu, kbrho, kg, kew, keb = jax.random.split(key, 8)

    N, C_in, H, W = 2, 4, 16, 16
    C_out, KH, KW = 8, 3, 3

    x = jax.random.normal(kx, (N, C_in, H, W), dtype=jnp.float32)

    # Deterministic parameter init mirroring BayesianConv2d.__init__
    weight_mu = jax.random.uniform(kwmu, (C_out, C_in, KH, KW), jnp.float32,
                                   minval=-0.2, maxval=0.2)
    weight_rho = -9.0 + 0.1 * jax.random.normal(kwrho, (C_out, C_in, KH, KW),
                                                jnp.float32)
    bias_mu = jax.random.uniform(kbmu, (C_out,), jnp.float32,
                                 minval=-0.2, maxval=0.2)
    bias_rho = -9.0 + 1.0 * jax.random.normal(kbrho, (C_out,), jnp.float32)

    # cgamma argument to forward() (relaxed-Bernoulli sample, ~1 in this model)
    cgamma = jax.random.uniform(kg, (C_out, C_in, KH, KW), jnp.float32,
                                minval=0.99, maxval=1.0)
    # reparameterization noise for Gaussian.rsample()
    eps_w = jax.random.normal(kew, (C_out, C_in, KH, KW), jnp.float32)
    eps_b = jax.random.normal(keb, (C_out,), jnp.float32)

    # Reference: F.conv2d(input, cgamma * w_sample, b_sample), stride 1, no pad.
    w_sample = cgamma * (weight_mu + jnp.log1p(jnp.exp(weight_rho)) * eps_w)
    b_sample = bias_mu + jnp.log1p(jnp.exp(bias_rho)) * eps_b
    y_ref = jax.lax.conv_general_dilated(
        x, w_sample, window_strides=(1, 1), padding="VALID",
        dimension_numbers=("NCHW", "OIHW", "NCHW")) + b_sample[None, :, None, None]

    # f32-operand path: matches the reference to tight tolerance.
    y32 = bayesian_conv2d(x, weight_mu, weight_rho, cgamma, eps_w,
                          bias_mu, bias_rho, eps_b, matmul_dtype=jnp.float32)
    y32 = jax.block_until_ready(y32)
    assert y32.shape == (N, C_out, H - KH + 1, W - KW + 1)
    np.testing.assert_allclose(np.asarray(y32), np.asarray(y_ref),
                               rtol=1e-4, atol=1e-4)

    # Default bf16-operand path (f32 MXU accumulation): looser tolerance.
    y16 = bayesian_conv2d(x, weight_mu, weight_rho, cgamma, eps_w,
                          bias_mu, bias_rho, eps_b)
    y16 = jax.block_until_ready(y16)
    np.testing.assert_allclose(np.asarray(y16), np.asarray(y_ref),
                               rtol=5e-2, atol=5e-2)

    print("KERNEL_OK")
</pallas_src>

<mosaic_0001>
module attributes {stable_mosaic.version = 11 : i64} {
  func.func @_sample_kernel(%arg0: i32, %arg1: memref<1x4x128xf32, #tpu.memory_space<vmem>>, %arg2: memref<1x4x128xf32, #tpu.memory_space<vmem>>, %arg3: memref<1x4x128xf32, #tpu.memory_space<vmem>>, %arg4: memref<1x4x128xf32, #tpu.memory_space<vmem>>, %arg5: memref<1x128xf32, #tpu.memory_space<vmem>>, %arg6: memref<1x128xf32, #tpu.memory_space<vmem>>, %arg7: memref<1x128xf32, #tpu.memory_space<vmem>>, %arg8: memref<1x4x128xf32, #tpu.memory_space<vmem>>, %arg9: memref<1x128xf32, #tpu.memory_space<vmem>>) attributes {dimension_semantics = [#tpu.dimension_semantics<arbitrary>], iteration_bounds = array<i64: 9>, scalar_prefetch = 0 : i64, scratch_operands = 0 : i64, tpu.core_type = #tpu.core_type<tc>, window_params = [{transform_indices = @transform_0, window_bounds = array<i64: 1, 4, 128>}, {transform_indices = @transform_1, window_bounds = array<i64: 1, 4, 128>}, {transform_indices = @transform_2, window_bounds = array<i64: 1, 4, 128>}, {transform_indices = @transform_3, window_bounds = array<i64: 1, 4, 128>}, {pipeline_mode = #tpu.pipeline_mode<synchronous>, transform_indices = @transform_4, window_bounds = array<i64: 1, 128>}, {pipeline_mode = #tpu.pipeline_mode<synchronous>, transform_indices = @transform_5, window_bounds = array<i64: 1, 128>}, {pipeline_mode = #tpu.pipeline_mode<synchronous>, transform_indices = @transform_6, window_bounds = array<i64: 1, 128>}, {transform_indices = @transform_7, window_bounds = array<i64: 1, 4, 128>}, {pipeline_mode = #tpu.pipeline_mode<synchronous>, transform_indices = @transform_8, window_bounds = array<i64: 1, 128>}]} {
    %c0 = arith.constant 0 : index
    %c0_0 = arith.constant 0 : index
    %c0_1 = arith.constant 0 : index
    %0 = vector.load %arg3[%c0, %c0_0, %c0_1] : memref<1x4x128xf32, #tpu.memory_space<vmem>>, vector<1x4x128xf32>
    %c0_2 = arith.constant 0 : index
    %c0_3 = arith.constant 0 : index
    %c0_4 = arith.constant 0 : index
    %1 = vector.load %arg1[%c0_2, %c0_3, %c0_4] : memref<1x4x128xf32, #tpu.memory_space<vmem>>, vector<1x4x128xf32>
    %c0_5 = arith.constant 0 : index
    %c0_6 = arith.constant 0 : index
    %c0_7 = arith.constant 0 : index
    %2 = vector.load %arg2[%c0_5, %c0_6, %c0_7] : memref<1x4x128xf32, #tpu.memory_space<vmem>>, vector<1x4x128xf32>
    %cst = arith.constant 2.000000e+01 : f32
    %3 = vector.broadcast %cst : f32 to vector<1x4x128xf32>
    %4 = arith.cmpf ogt, %2, %3 : vector<1x4x128xf32>
    %cst_8 = arith.constant 2.000000e+01 : f32
    %5 = vector.broadcast %cst_8 : f32 to vector<1x4x128xf32>
    %6 = arith.minimumf %2, %5 : vector<1x4x128xf32>
    %7 = math.exp %6 : vector<1x4x128xf32>
    %8 = math.log1p %7 : vector<1x4x128xf32>
    %9 = arith.select %4, %2, %8 : vector<1x4x128xi1>, vector<1x4x128xf32>
    %c0_9 = arith.constant 0 : index
    %c0_10 = arith.constant 0 : index
    %c0_11 = arith.constant 0 : index
    %10 = vector.load %arg4[%c0_9, %c0_10, %c0_11] : memref<1x4x128xf32, #tpu.memory_space<vmem>>, vector<1x4x128xf32>
    %11 = arith.mulf %9, %10 : vector<1x4x128xf32>
    %12 = arith.addf %1, %11 : vector<1x4x128xf32>
    %13 = arith.mulf %0, %12 : vector<1x4x128xf32>
    %c0_12 = arith.constant 0 : index
    %c0_13 = arith.constant 0 : index
    %c0_14 = arith.constant 0 : index
    %14 = vector.load %arg8[%c0_12, %c0_13, %c0_14] : memref<1x4x128xf32, #tpu.memory_space<vmem>>, vector<1x4x128xf32>
    tpu.vector_store %arg8[%c0_12, %c0_13, %c0_14], %13 {strides = array<i32>} : memref<1x4x128xf32, #tpu.memory_space<vmem>>, vector<1x4x128xf32>,
    %c0_15 = arith.constant 0 : index
    %c0_16 = arith.constant 0 : index
    %15 = vector.load %arg5[%c0_15, %c0_16] : memref<1x128xf32, #tpu.memory_space<vmem>>, vector<1x128xf32>
    %c0_17 = arith.constant 0 : index
    %c0_18 = arith.constant 0 : index
    %16 = vector.load %arg6[%c0_17, %c0_18] : memref<1x128xf32, #tpu.memory_space<vmem>>, vector<1x128xf32>
    %cst_19 = arith.constant 2.000000e+01 : f32
    %17 = vector.broadcast %cst_19 : f32 to vector<1x128xf32>
    %18 = arith.cmpf ogt, %16, %17 : vector<1x128xf32>
    %cst_20 = arith.constant 2.000000e+01 : f32
    %19 = vector.broadcast %cst_20 : f32 to vector<1x128xf32>
    %20 = arith.minimumf %16, %19 : vector<1x128xf32>
    %21 = math.exp %20 : vector<1x128xf32>
    %22 = math.log1p %21 : vector<1x128xf32>
    %23 = arith.select %18, %16, %22 : vector<1x128xi1>, vector<1x128xf32>
    %c0_21 = arith.constant 0 : index
    %c0_22 = arith.constant 0 : index
    %24 = vector.load %arg7[%c0_21, %c0_22] : memref<1x128xf32, #tpu.memory_space<vmem>>, vector<1x128xf32>
    %25 = arith.mulf %23, %24 : vector<1x128xf32>
    %26 = arith.addf %15, %25 : vector<1x128xf32>
    %c0_23 = arith.constant 0 : index
    %c0_24 = arith.constant 0 : index
    %27 = vector.load %arg9[%c0_23, %c0_24] : memref<1x128xf32, #tpu.memory_space<vmem>>, vector<1x128xf32>
    tpu.vector_store %arg9[%c0_23, %c0_24], %26 {strides = array<i32>} : memref<1x128xf32, #tpu.memory_space<vmem>>, vector<1x128xf32>,
    return
  }
  func.func @transform_0(%arg0: i32) -> (i32, i32, i32) {
    %c0_i32 = arith.constant 0 : i32
    %c0_i32_0 = arith.constant 0 : i32
    %c0_i32_1 = arith.constant 0 : i32
    return %arg0, %c0_i32, %c0_i32_0 : i32, i32, i32
  }
  func.func @transform_1(%arg0: i32) -> (i32, i32, i32) {
    %c0_i32 = arith.constant 0 : i32
    %c0_i32_0 = arith.constant 0 : i32
    %c0_i32_1 = arith.constant 0 : i32
    return %arg0, %c0_i32, %c0_i32_0 : i32, i32, i32
  }
  func.func @transform_2(%arg0: i32) -> (i32, i32, i32) {
    %c0_i32 = arith.constant 0 : i32
    %c0_i32_0 = arith.constant 0 : i32
    %c0_i32_1 = arith.constant 0 : i32
    return %arg0, %c0_i32, %c0_i32_0 : i32, i32, i32
  }
  func.func @transform_3(%arg0: i32) -> (i32, i32, i32) {
    %c0_i32 = arith.constant 0 : i32
    %c0_i32_0 = arith.constant 0 : i32
    %c0_i32_1 = arith.constant 0 : i32
    return %arg0, %c0_i32, %c0_i32_0 : i32, i32, i32
  }
  func.func @transform_4(%arg0: i32) -> (i32, i32) {
    %c0_i32 = arith.constant 0 : i32
    %c0_i32_0 = arith.constant 0 : i32
    %c0_i32_1 = arith.constant 0 : i32
    return %c0_i32, %c0_i32_0 : i32, i32
  }
  func.func @transform_5(%arg0: i32) -> (i32, i32) {
    %c0_i32 = arith.constant 0 : i32
    %c0_i32_0 = arith.constant 0 : i32
    %c0_i32_1 = arith.constant 0 : i32
    return %c0_i32, %c0_i32_0 : i32, i32
  }
  func.func @transform_6(%arg0: i32) -> (i32, i32) {
    %c0_i32 = arith.constant 0 : i32
    %c0_i32_0 = arith.constant 0 : i32
    %c0_i32_1 = arith.constant 0 : i32
    return %c0_i32, %c0_i32_0 : i32, i32
  }
  func.func @transform_7(%arg0: i32) -> (i32, i32, i32) {
    %c0_i32 = arith.constant 0 : i32
    %c0_i32_0 = arith.constant 0 : i32
    %c0_i32_1 = arith.constant 0 : i32
    return %arg0, %c0_i32, %c0_i32_0 : i32, i32, i32
  }
  func.func @transform_8(%arg0: i32) -> (i32, i32) {
    %c0_i32 = arith.constant 0 : i32
    %c0_i32_0 = arith.constant 0 : i32
    %c0_i32_1 = arith.constant 0 : i32
    return %c0_i32, %c0_i32_0 : i32, i32
  }
}

</mosaic_0001>

<bundles_post_ra>
// kernel: tpu_custom_call.1
= control target key start
LH: loop header
LB: loop body
LE: loop exit
PB: predicated region body
PF: predicated region fallthrough
CT: control target
= control target key end

     0   :  { %s1327_s0 = inlined_call_operand.hbm [shape: f32[9,4,128], index: 0, kind: input, shape index: {}]   ;;  %s1328_s1 = inlined_call_operand.hbm [shape: f32[9,4,128], index: 1, kind: input, shape index: {}]   ;;  %s1329_s2 = inlined_call_operand.hbm [shape: f32[9,4,128], index: 2, kind: input, shape index: {}]   ;;  %s1330_s3 = inlined_call_operand.hbm [shape: f32[9,4,128], index: 3, kind: input, shape index: {}]   ;;  %s1331_s4 = inlined_call_operand.vmem [shape: f32[1,128], index: 4, kind: input, shape index: {}]   ;;  %s1332_s5 = inlined_call_operand.vmem [shape: f32[1,128], index: 5, kind: input, shape index: {}]   ;;  %s1333_s6 = inlined_call_operand.vmem [shape: f32[1,128], index: 6, kind: input, shape index: {}]   ;;  %s1334_s7 = inlined_call_operand.hbm [shape: f32[9,4,128], index: 7, kind: output, shape index: {0}]   ;;  %s1335_s8 = inlined_call_operand.hbm [shape: f32[1,128], index: 8, kind: output, shape index: {1}]  }
   0x1   :  { %1347 = sst [smem:[#allocation24_spill]] %s1328_s1 }
   0x2   :  { %14 = vsyncpa [#allocation3], 0 }
   0x3   :  { %16 = vsyncpa [#allocation3 + $0x1], 0 }
   0x4   :  { %17 = vsyncpa [#allocation6], 0 }
   0x5   :  { %19 = vsyncpa [#allocation6 + $0x1], 0 }
   0x6   :  { %20 = vsyncpa [#allocation9], 0 }
   0x7   :  { %22 = vsyncpa [#allocation9 + $0x1], 0 }
   0x8   :  { %23 = vsyncpa [#allocation4], 0 }
   0x9   :  { %25 = vsyncpa [#allocation4 + $0x1], 0 }
   0xa   :  { %26 = vsyncpa [#allocation12], 0  ;;  %s1018_s27 = smov 0   ;;  %s1020_s28 = smov 0  }
   0xb   :  { %s1022_s29 = smov 0   ;;  %s1024_s30 = smov 0  }
   0xc LB: > { %1348 = sst [smem:[#allocation18_spill]] %s953_s27  ;;  %s1039_s9 = sadd.s32 4294967295, %s965_s30   ;;  %s965_s30 = sphi %s1024_s30, %s1377_s30   ;;  %s961_s29 = sphi %s1022_s29, %s1379_s29   ;;  %s957_s28 = sphi %s1020_s28, %s1381_s28   ;;  %s953_s27 = sphi %s1018_s27, %s1380_s27  }
   0xd   : > { %1349 = sst [smem:[#allocation19_spill]] %s961_s29  ;;  %s642_s10 = sadd.s32 4294967294, %s965_s30  }
   0xe   : > { %1350 = sst [smem:[#allocation20_spill]] %s965_s30  ;;  %s1043_s11 = sadd.s32 1, %s965_s30  }
   0xf   : > { %1351 = sst [smem:[#allocation21_spill]] %s1043_s11  ;;  %s39_s12 = sadd.s32 1, %s961_s29 }
  0x10   : > { %s36_s13 = ssub.s32 %s965_s30, %s1043_s11  ;;  %p46_p0 = scmp.ne.s32.totalorder %s961_s29, %s957_s28 }
  0x11   : > { %p37_p1 = scmp.eq.s32.totalorder %s36_s13, 0  ;;  %p47_p2 = scmp.eq.s32.totalorder %s965_s30, 0 }
  0x12   : > { %p52_p3 = scmp.ne.s32.totalorder %s957_s28, %s953_s27  ;;  %p53_p4 = scmp.eq.s32.totalorder %s1039_s9, 0 }
  0x13   : > { %s1055_s14 = scalar_select %p37_p1, %s961_s29, %s39_s12  }
  0x14   : > { %p48_p5 = por %p47_p2, %p46_p0  ;;  %p1057_p6 = por %p53_p4, %p52_p3 }
  0x15   : > { %1352 = sst [smem:[#allocation22_spill]] %s1055_s14  ;;  %p1339_p7 = scmp.eq.s32.totalorder %s1039_s9, 8 }
  0x16   : > { %s1353_s15 = scalar_select %p1057_p6, 1, 0 }
  0x17   : > { %p223_p8 = scmp.eq.s32.totalorder %s642_s10, 8  ;;  %p696_p9 = scmp.lt.s32.totalorder %s965_s30, 9 }
  0x18   : > { %p1065_p10 = por %p1339_p7, %p46_p0  ;;  %s1074_s18 = sand.u32 1, %s961_s29  }
  0x19   : > { %p1069_p11 = por %p223_p8, %p52_p3  ;;  %s1077_s19 = sshll.u32 %s965_s30, 6 }
  0x1a   : > { %s1354_s16 = scalar_select %p1065_p10, 1, 0 }
  0x1b   : > { %s1355_s17 = scalar_select %p1069_p11, 1, 0 }
  0x1c   : > { %s1080_s20 = sshll.u32 %s1074_s18, 2  ;;  %p1082_p12 = pnand %p696_p9, %p48_p5 }
  0x1d   : > { %1356 = sst [smem:[#allocation23_spill]] %s1355_s17  ;;  %s291_s22 = sand.u32 1, %s965_s30  }
  0x1e   : > { %s1357_s21 = scalar_select %p1082_p12, 1, 0 }
  0x1f   : > { %s1358_s1 = sld [smem:[#allocation24_spill]]  ;;  %s295_s26 = scalar_lea.vmem [#allocation5], %s1080_s20 }
  0x20   : > { %s302_s10 = sshll.u32 %s295_s26, 4  ;;  %s1097_s12 = scalar_lea.sflag [#allocation6], %s291_s22  ;;  %s1094_s10 = int_to_ptr.vmem [resolvable:$true] %s302_s10 }
  0x21   : > { %p1103_p1 = pneg %p1082_p12 }
  0x25   : > { %s1091_s25 = scalar_lea.hbm %s1358_s1, %s1077_s19  ;;  %s746_s26 = scalar_lea.hbm %s1358_s1, 576 }
  0x26   : > { %s741_s13 = scalar_lea.hbm %s1091_s25, 64  ;;  %p747_p4 = scmp.lt.u32.totalorder %s1091_s25, %s1358_s1 }
  0x27   : > { %p742_p0 = scmp.ne.s32.totalorder %s1091_s25, %s741_s13  ;;  %p748_p5 = scmp.lt.u32.totalorder %s746_s26, %s741_s13 }
  0x28   : > { %p750_p9 = scmp.lt.u32.totalorder %s741_s13, %s1091_s25 }
  0x29   : > { %p744_p2 = pnand %p1103_p1, %p742_p0  ;;  %p749_p8 = por %p748_p5, %p747_p4 }
  0x2b   : > { %p745_p3 = pneg %p744_p2  ;;  %p751_p7 = por %p750_p9, %p749_p8 }
  0x2d   : > { %p752_p13 = pnand %p751_p7, %p745_p3 }
  0x2f   : > { %755 = shalt.err (!%p752_p13)
}
  0x30   : > { %s756_s22 = scalar_lea.vmem %s1094_s10, 64  ;;  %s967_s23 = smov [#allocation5]  }
  0x31   : > { %p757_p0 = scmp.ne.s32.totalorder %s1094_s10, %s756_s22  ;;  %s761_s24 = sshll.u32 %s967_s23, 4  ;;  %s762_s24 = int_to_ptr.vmem [resolvable:$false] %s761_s24 }
  0x32   : > { %s763_s29 = scalar_lea.vmem %s762_s24, 128  ;;  %p764_p10 = scmp.lt.s32.totalorder %s1094_s10, %s762_s24 }
  0x33   : > { %p759_p2 = pnand %p757_p0, %p1103_p1  ;;  %p765_p6 = scmp.lt.s32.totalorder %s763_s29, %s756_s22 }
  0x35   : > { %p760_p11 = pneg %p759_p2  ;;  %p766_p4 = por %p765_p6, %p764_p10 }
  0x37   : > { %p767_p5 = pnand %p766_p4, %p760_p11 }
  0x39   : > { %770 = shalt.err (!%p767_p5)
}
  0x3a   : > { %685 = dma.hbm_to_vmem [thread:$0]  (!%p1082_p12), %s1091_s25, 64, %s1094_s10, %s1097_s12  }
  0x3b   : > { %p343_p7 = scmp.lt.s32.totalorder %s965_s30, 10  ;;  %s1132_s26 = scalar_lea.hbm %s1327_s0, %s1077_s19 }
  0x3c   : > { %p1360_p6 = scmp.ge.s32.totalorder %s965_s30, 1  ;;  %s277_s23 = scalar_lea.vmem [#allocation2], %s1080_s20 }
  0x3d   : > { %s284_s24 = sshll.u32 %s277_s23, 4  ;;  %s274_s29 = scalar_lea.sflag [#allocation3], %s1074_s18  ;;  %s285_s24 = int_to_ptr.vmem [resolvable:$true] %s284_s24 }
  0x3e   : > { %p1136_p10 = pnand %p1360_p6, %p343_p7  ;;  %s771_s25 = scalar_lea.hbm %s1132_s26, 64 }
  0x3f   : > { %p772_p11 = scmp.ne.s32.totalorder %s1132_s26, %s771_s25  ;;  %s776_s13 = scalar_lea.hbm %s1327_s0, 576 }
  0x40   : > { %s1361_s22 = scalar_select %p1136_p10, 1, 0 }
  0x41   : > { %p774_p13 = pnand %p772_p11, %p1103_p1  ;;  %p777_p8 = scmp.lt.u32.totalorder %s1132_s26, %s1327_s0 }
  0x42   : > { %p778_p9 = scmp.lt.u32.totalorder %s776_s13, %s771_s25  ;;  %p780_p2 = scmp.lt.u32.totalorder %s771_s25, %s1132_s26 }
  0x43   : > { %p775_p3 = pneg %p774_p13 }
  0x44   : > { %p779_p0 = por %p778_p9, %p777_p8 }
  0x46   : > { %p781_p4 = por %p780_p2, %p779_p0 }
  0x48   : > { %p782_p5 = pnand %p781_p4, %p775_p3 }
  0x4a   : > { %785 = shalt.err (!%p782_p5)
}
  0x4b   : > { %s786_s23 = scalar_lea.vmem %s285_s24, 64  ;;  %s968_s27 = smov [#allocation2]  }
  0x4c   : > { %p787_p7 = scmp.ne.s32.totalorder %s285_s24, %s786_s23  ;;  %s791_s30 = sshll.u32 %s968_s27, 4  ;;  %s792_s30 = int_to_ptr.vmem [resolvable:$false] %s791_s30 }
  0x4d   : > { %s793_s10 = scalar_lea.vmem %s792_s30, 128  ;;  %p794_p13 = scmp.lt.s32.totalorder %s285_s24, %s792_s30 }
  0x4e   : > { %p789_p6 = pnand %p787_p7, %p1103_p1  ;;  %p795_p10 = scmp.lt.s32.totalorder %s793_s10, %s786_s23 }
  0x50   : > { %p790_p11 = pneg %p789_p6  ;;  %p796_p12 = por %p795_p10, %p794_p13 }
  0x52   : > { %p797_p8 = pnand %p796_p12, %p790_p11 }
  0x54   : > { %800 = shalt.err (!%p797_p8)
}
  0x55   : > { %p1362_p9 = scmp.ne.s32.totalorder %s1357_s21, 0  ;;  %s1163_s25 = scalar_lea.hbm %s1329_s2, %s1077_s19 }
  0x56   : > { %s313_s27 = scalar_lea.vmem [#allocation7], %s1080_s20  ;;  %s801_s11 = scalar_lea.hbm %s1163_s25, 64 }
  0x57   : > { %682 = dma.hbm_to_vmem [thread:$0]  (!%p1362_p9), %s1132_s26, 64, %s285_s24, %s274_s29  }
  0x58   : > { %s320_s30 = sshll.u32 %s313_s27, 4  ;;  %p802_p12 = scmp.ne.s32.totalorder %s1163_s25, %s801_s11  ;;  %s321_s30 = int_to_ptr.vmem [resolvable:$true] %s320_s30 }
  0x59   : > { %s806_s26 = scalar_lea.hbm %s1329_s2, 576  ;;  %p807_p0 = scmp.lt.u32.totalorder %s1163_s25, %s1329_s2 }
  0x5a   : > { %p804_p10 = pnand %p802_p12, %p1103_p1  ;;  %p808_p2 = scmp.lt.u32.totalorder %s806_s26, %s801_s11 }
  0x5b   : > { %p810_p5 = scmp.lt.u32.totalorder %s801_s11, %s1163_s25 }
  0x5c   : > { %p805_p3 = pneg %p804_p10  ;;  %p809_p4 = por %p808_p2, %p807_p0 }
  0x5e   : > { %p811_p7 = por %p810_p5, %p809_p4 }
  0x60   : > { %p812_p6 = pnand %p811_p7, %p805_p3 }
  0x62   : > { %815 = shalt.err (!%p812_p6)
}
  0x63   : > { %s816_s10 = scalar_lea.vmem %s321_s30, 64  ;;  %s969_s1 = smov [#allocation7]  }
  0x64   : > { %p817_p11 = scmp.ne.s32.totalorder %s321_s30, %s816_s10  ;;  %s821_s17 = sshll.u32 %s969_s1, 4  ;;  %s822_s17 = int_to_ptr.vmem [resolvable:$false] %s821_s17 }
  0x65   : > { %s823_s27 = scalar_lea.vmem %s822_s17, 128  ;;  %p824_p12 = scmp.lt.s32.totalorder %s321_s30, %s822_s17 }
  0x66   : > { %p819_p13 = pnand %p817_p11, %p1103_p1  ;;  %p825_p10 = scmp.lt.s32.totalorder %s823_s27, %s816_s10 }
  0x68   : > { %p820_p8 = pneg %p819_p13  ;;  %p826_p9 = por %p825_p10, %p824_p12 }
  0x6a   : > { %p827_p0 = pnand %p826_p9, %p820_p8 }
  0x6c   : > { %830 = shalt.err (!%p827_p0)
}
  0x6d   : > { %p1363_p2 = scmp.ne.s32.totalorder %s1357_s21, 0  ;;  %s1188_s23 = scalar_lea.hbm %s1330_s3, %s1077_s19 }
  0x6e   : > { %s331_s26 = scalar_lea.vmem [#allocation8], %s1080_s20  ;;  %s328_s29 = scalar_lea.sflag [#allocation9], %s1074_s18 }
  0x6f   : > { %688 = dma.hbm_to_vmem [thread:$0]  (!%p1363_p2), %s1163_s25, 64, %s321_s30, %s1097_s12  }
  0x70   : > { %s338_s24 = sshll.u32 %s331_s26, 4  ;;  %s831_s10 = scalar_lea.hbm %s1188_s23, 64  ;;  %s339_s24 = int_to_ptr.vmem [resolvable:$true] %s338_s24 }
  0x71   : > { %p832_p9 = scmp.ne.s32.totalorder %s1188_s23, %s831_s10  ;;  %s836_s25 = scalar_lea.hbm %s1330_s3, 576 }
  0x72   : > { %p837_p5 = scmp.lt.u32.totalorder %s1188_s23, %s1330_s3  ;;  %p838_p7 = scmp.lt.u32.totalorder %s836_s25, %s831_s10 }
  0x73   : > { %p834_p3 = pnand %p832_p9, %p1103_p1  ;;  %p840_p11 = scmp.lt.u32.totalorder %s831_s10, %s1188_s23 }
  0x74   : > { %p839_p6 = por %p838_p7, %p837_p5 }
  0x75   : > { %p835_p4 = pneg %p834_p3 }
  0x76   : > { %p841_p13 = por %p840_p11, %p839_p6 }
  0x78   : > { %p842_p8 = pnand %p841_p13, %p835_p4 }
  0x7a   : > { %845 = shalt.err (!%p842_p8)
}
  0x7b   : > { %s846_s18 = scalar_lea.vmem %s339_s24, 64  ;;  %s970_s20 = smov [#allocation8]  }
  0x7c   : > { %p847_p12 = scmp.ne.s32.totalorder %s339_s24, %s846_s18  ;;  %s851_s17 = sshll.u32 %s970_s20, 4  ;;  %s852_s17 = int_to_ptr.vmem [resolvable:$false] %s851_s17 }
  0x7d   : > { %s853_s27 = scalar_lea.vmem %s852_s17, 128  ;;  %p854_p9 = scmp.lt.s32.totalorder %s339_s24, %s852_s17 }
  0x7e   : > { %p849_p10 = pnand %p847_p12, %p1103_p1  ;;  %p855_p3 = scmp.lt.s32.totalorder %s853_s27, %s846_s18 }
  0x80   : > { %p850_p0 = pneg %p849_p10  ;;  %p856_p2 = por %p855_p3, %p854_p9 }
  0x82   : > { %p857_p5 = pnand %p856_p2, %p850_p0 }
  0x84   : > { %860 = shalt.err (!%p857_p5)
}
  0x85   : > { %p1364_p7 = scmp.ne.s32.totalorder %s1357_s21, 0  ;;  %p1365_p4 = scmp.ne.s32.totalorder %s1361_s22, 0 }
  0x86   : > { %s1212_s14 = sand.u32 (!%p1365_p4), 1, %s957_s28   ;;  %p1366_p1 = scmp.ne.s32.totalorder (!%p1365_p4), %s1353_s15, 0 }
  0x87   : > { %691 = dma.hbm_to_vmem [thread:$0]  (!%p1364_p7), %s1188_s23, 64, %s339_s24, %s328_s29  }
  0x88   : > { %347 = sbr.rel (%p1365_p4) target bundleno = 229 (0xe5), region = 48  ;;  %s1215_s11 = sshll.u32 (!%p1365_p4), %s1212_s14, 2 }
  0x89   : > { %s350_s13 = scalar_lea.sflag (!%p1365_p4), [#allocation3], %s1212_s14  ;;  %s353_s26 = scalar_lea.vmem (!%p1365_p4), [#allocation2], %s1215_s11 }
  0x8f   : > { %932 = dma.done.wait (%p1366_p1), %s350_s13, 64  }
  0x90   : > { %934 = vsyncadd (%p1366_p1), %s350_s13, 4294967232  ;;  %s358_s21 = sand.u32 1, %s1039_s9   ;;  %s362_s23 = scalar_lea.vmem [#allocation5], %s1215_s11 }
  0x91   : > { %s359_s22 = scalar_lea.sflag [#allocation6], %s358_s21 }
  0x92   : > { %936 = dma.done.wait (%p1366_p1), %s359_s22, 128  }
  0x93   : > { %938 = vsyncadd (%p1366_p1), %s359_s22, 4294967168  ;;  %s371_s24 = scalar_lea.vmem [#allocation7], %s1215_s11  ;;  %s377_s29 = scalar_lea.sflag [#allocation9], %s1212_s14 }
  0x94   : > { %s380_s10 = scalar_lea.vmem [#allocation8], %s1215_s11 }
  0x95   : > { %940 = dma.done.wait (%p1366_p1), %s377_s29, 64  }
  0x96   : > { %942 = vsyncadd (%p1366_p1), %s377_s29, 4294967232  ;;  %v430_v0 = vld [vmem:[%s362_s23] sm:$0xf]  ;;  %v451_v2 = vld [vmem:[%s1332_s5] sm:$0x1]  ;;  %s425_s30 = scalar_lea.vmem [#allocation10], %s1215_s11 }
  0x97   : > { %v432_v1 = vmin.f32 %v430_v0, 20.0  ;;  %v453_v4 = vmin.f32 %v451_v2, 20.0  ;;  %vm431_vm1 = vcmp.gt.f32.partialorder %v430_v0, 20.0  ;;  %v445_v21 = vld [vmem:[%s380_s10] sm:$0xf]  ;;  %vm452_vm3 = vcmp.gt.f32.partialorder %v451_v2, 20.0 }
  0x98   : > { %v429_v24 = vld [vmem:[%s353_s26] sm:$0xf]  ;;  %v428_v29 = vld [vmem:[%s371_s24] sm:$0xf]  ;;  %s484_s19 = sshll.u32 %s425_s30, 4  ;;  %s660_s17 = sshll.u32 %s1039_s9, 6  ;;  %s1251_s19 = int_to_ptr.vmem [resolvable:$true] %s484_s19 }
  0x99   : > { %v433_v3 = vmul.f32 1.442695, %v432_v1  ;;  %v454_v5 = vmul.f32 1.442695, %v453_v4  ;;  %v466_v26 = vld [vmem:[%s1333_s6] sm:$0x1]  ;;  %s1256_s21 = scalar_lea.hbm %s1334_s7, %s660_s17 }
  0x9a   : > { %v450_v30 = vld [vmem:[%s1331_s4] sm:$0x1]  ;;  %s971_s27 = smov [#allocation11]   ;;  %s471_s22 = scalar_lea.sflag [#allocation4], %s1212_s14 }
  0x9b   : > { %733 = vpow2.f32 %v433_v3  ;;  %s495_s13 = sshll.u32 %s971_s27, 4  ;;  %s861_s23 = scalar_lea.vmem %s1251_s19, 64  ;;  %s1258_s13 = int_to_ptr.vmem [resolvable:$true] %s495_s13 }
  0x9c   : > { %735 = vpow2.f32 %v454_v5  ;;  %p862_p2 = scmp.ne.s32.totalorder %s1251_s19, %s861_s23  ;;  %p1367_p6 = scmp.ne.s32.totalorder %s1354_s16, 0 }
  0x9d   : > { %s972_s24 = smov [#allocation10]  }
  0x9e   : > { %p863_p11 = pnand %p862_p2, %p1367_p6  ;;  %s865_s29 = sshll.u32 %s972_s24, 4  ;;  %s866_s29 = int_to_ptr.vmem [resolvable:$false] %s865_s29 }
  0x9f   : > { %s867_s10 = scalar_lea.vmem %s866_s29, 128  ;;  %p868_p8 = scmp.lt.s32.totalorder %s1251_s19, %s866_s29 }
  0xa0   : > { %p864_p13 = pneg %p863_p11  ;;  %p869_p12 = scmp.lt.s32.totalorder %s867_s10, %s861_s23 }
  0xa2   : > { %p870_p10 = por %p869_p12, %p868_p8 }
  0xa4   : > { %p871_p0 = pnand %p870_p10, %p864_p13 }
  0xa5   : > { %v734_v6 = vpop.eup %733 }
  0xa6   : > { %v435_v7 = vadd.f32 1.0, %v734_v6  ;;  %v736_v8 = vpop.eup %735  ;;  %v438_v10 = vmul.f32 -0.5, %v734_v6  ;;  %v441_v13 = vand.u32 2147483647, %v734_v6 }
  0xa7   : > { %v456_v9 = vadd.f32 1.0, %v736_v8  ;;  %v459_v11 = vmul.f32 -0.5, %v736_v8  ;;  %v462_v15 = vand.u32 2147483647, %v736_v8 }
  0xa8   : > { %737 = vlog2.f32 %v435_v7  ;;  %v439_v12 = vadd.f32 1.0, %v438_v10  ;;  %vm442_vm0 = vcmp.lt.f32.partialorder %v441_v13, 0.0004427343 }
  0xa9   : > { %739 = vlog2.f32 %v456_v9  ;;  %v460_v14 = vadd.f32 1.0, %v459_v11  ;;  %vm463_vm2 = vcmp.lt.f32.partialorder %v462_v15, 0.0004427343 }
  0xaa   : > { %v440_v16 = vmul.f32 %v734_v6, %v439_v12 }
  0xab   : > { %v461_v19 = vmul.f32 %v736_v8, %v460_v14 }
  0xb2   : > { %v738_v17 = vpop.eup %737 }
  0xb3   : > { %v437_v18 = vmul.f32 0.6931472, %v738_v17  ;;  %v740_v20 = vpop.eup %739 }
  0xb4   : > { %v458_v23 = vmul.f32 0.6931472, %v740_v20 }
  0xb5   : > { %v443_v22 = vsel %vm442_vm0, %v440_v16, %v437_v18 }
  0xb6   : > { %v444_v25 = vsel %vm431_vm1, %v430_v0, %v443_v22  ;;  %v464_v28 = vsel %vm463_vm2, %v461_v19, %v458_v23 }
  0xb7   : > { %v446_v27 = vmul.f32 %v445_v21, %v444_v25  ;;  %v465_v31 = vsel %vm452_vm3, %v451_v2, %v464_v28 }
  0xb8   : > { %v467_v33 = vmul.f32 %v466_v26, %v465_v31 }
  0xb9   : > { %v447_v32 = vadd.f32 %v446_v27, %v429_v24 }
  0xba   : > { %v468_v35 = vadd.f32 %v467_v33, %v450_v30 }
  0xbb   : > { %v448_v34 = vmul.f32 %v447_v32, %v428_v29 }
  0xbc   : > { %469 = vst [vmem:[#allocation11] sm:$0x1] %v468_v35 }
  0xbd   : > { %449 = vst [vmem:[%s425_s30] sm:$0xf] %v448_v34 }
  0xbe   : > { %874 = shalt.err (!%p871_p0)
}
  0xbf   : > { %s875_s14 = scalar_lea.hbm %s1256_s21, 64  ;;  %s879_s15 = scalar_lea.hbm %s1334_s7, 576 }
  0xc0   : > { %p876_p9 = scmp.ne.s32.totalorder %s1256_s21, %s875_s14  ;;  %p880_p7 = scmp.lt.u32.totalorder %s1256_s21, %s1334_s7 }
  0xc1   : > { %p881_p4 = scmp.lt.u32.totalorder %s879_s15, %s875_s14  ;;  %p883_p2 = scmp.lt.u32.totalorder %s875_s14, %s1256_s21 }
  0xc2   : > { %p877_p3 = pnand %p876_p9, %p1367_p6 }
  0xc3   : > { %p882_p1 = por %p881_p4, %p880_p7 }
  0xc4   : > { %p878_p5 = pneg %p877_p3 }
  0xc5   : > { %p884_p11 = por %p883_p2, %p882_p1 }
  0xc7   : > { %p885_p13 = pnand %p884_p11, %p878_p5 }
  0xc9   : > { %888 = shalt.err (!%p885_p13)
}
  0xca   : > { %673 = dma.vmem_to_hbm [thread:$0]  (%p1367_p6), %s1251_s19, 64, %s1256_s21, %s471_s22  }
  0xcb   : > { %s889_s18 = scalar_lea.vmem %s1258_s13, 16  ;;  %p1368_p12 = scmp.eq.s32.totalorder %s1039_s9, 8 }
  0xcc   : > { %p890_p8 = scmp.ne.s32.totalorder %s1258_s13, %s889_s18  ;;  %s895_s20 = scalar_lea.vmem %s1258_s13, 32 }
  0xcd   : > { %p896_p9 = scmp.lt.s32.totalorder %s1258_s13, %s1258_s13  ;;  %p897_p3 = scmp.lt.s32.totalorder %s895_s20, %s889_s18 }
  0xce   : > { %p891_p10 = pnand %p890_p8, %p1368_p12 }
  0xcf   : > { %p898_p5 = por %p897_p3, %p896_p9 }
  0xd0   : > { %p892_p0 = pneg %p891_p10 }
  0xd2   : > { %p899_p7 = pnand %p898_p5, %p892_p0 }
  0xd4   : > { %902 = shalt.err (!%p899_p7)
}
  0xd5   : > { %s903_s27 = scalar_lea.hbm %s1335_s8, 16  ;;  %p1369_p4 = pmov %p1368_p12 }
  0xd6   : > { %p904_p6 = scmp.ne.s32.totalorder %s1335_s8, %s903_s27  ;;  %p909_p11 = scmp.lt.u32.totalorder %s903_s27, %s1335_s8 }
  0xd8   : > { %p905_p1 = pnand %p904_p6, %p1369_p4 }
  0xda   : > { %p906_p2 = pneg %p905_p1 }
  0xdc   : > { %p911_p13 = pnand %p909_p11, %p906_p2 }
  0xde   : > { %914 = shalt.err (!%p911_p13)
}
  0xdf   : > { %p1370_p8 = pmov %p1369_p4  ;;  %p1371_p12 = pmov %p1369_p4 }
  0xe1   : > { %675 = dma.vmem_to_hbm [thread:$0]  (%p1370_p8), %s1258_s13, 16, %s1335_s8, [#allocation12]  }
  0xe2   : > { %944 = dma.done.wait (%p1371_p12), [#allocation12], 16   ;;  %p1372_p10 = pmov %p1369_p4 }
  0xe4   : > { %946 = vsyncadd (%p1372_p10), [#allocation12], 4294967280 }
  0xe5 PF: > { %s1373_s24 = sld [smem:[#allocation20_spill]]  ;;  %s1374_s29 = sld [smem:[#allocation18_spill]] }
  0xe6   : > { %s1375_s10 = sld [smem:[#allocation23_spill]] }
  0xeb   : > { %p699_p0 = scmp.ge.s32.totalorder %s1373_s24, 2  ;;  %s511_s14 = sand.u32 1, %s1374_s29  }
  0xec   : > { %p1376_p9 = scmp.ne.s32.totalorder %s1375_s10, 0  ;;  %s512_s1 = scalar_lea.sflag [#allocation4], %s511_s14 }
  0xee   : > { %p693_p3 = pnand %p699_p0, %p1376_p9 }
  0xf0   : > { %948 = dma.done.wait (!%p693_p3), %s512_s1, 64  }
  0xf1   : > { %950 = vsyncadd (!%p693_p3), %s512_s1, 4294967232  ;;  %s1377_s30 = sld [smem:[#allocation21_spill]]  ;;  %s1378_s12 = sld [smem:[#allocation19_spill]] }
  0xf2   : > { %s1379_s29 = sld [smem:[#allocation22_spill]]  ;;  %s1380_s27 = smov %s957_s28 }
  0xf7   : > { %p29_p5 = scmp.ge.s32.totalorder %s1377_s30, 11   ;;  %s1381_s28 = smov %s1378_s12 }
  0xf9   :  { %31 = sbr.rel (!%p29_p5) target bundleno = 12 (0xc), region = 138 }
 0x100   :  { %517 = vsyncpa [#allocation3], 1 }
 0x101   :  { %519 = vsyncpa [#allocation3 + $0x1], 1 }
 0x102   :  { %520 = vsyncpa [#allocation6], 1 }
 0x103   :  { %522 = vsyncpa [#allocation6 + $0x1], 1 }
 0x104   :  { %523 = vsyncpa [#allocation9], 1 }
 0x105   :  { %525 = vsyncpa [#allocation9 + $0x1], 1 }
 0x106   :  { %526 = vsyncpa [#allocation4], 1 }
 0x107   :  { %528 = vsyncpa [#allocation4 + $0x1], 1 }
 0x108   :  { %529 = vsyncpa [#allocation12], 1 }

</bundles_post_ra>
